<compile_context>
chip_gen: v6e
topology: v6e:2x2x1
jax: 0.10.0
libtpu: 0.0.40
codegen_flags: <defaults>
</compile_context>

<pallas_src>
import functools

import jax
import jax.numpy as jnp
import numpy as np
from jax.experimental import pallas as pl
from jax.experimental.pallas import tpu as pltpu


def _round_up(x, m):
    return ((x + m - 1) // m) * m


def clme_kernel(cl_dim, eps, s_ref, r_ref, p_ref, ws_ref, wr_ref, wp_ref,
                b_ref, o_ref):
    """One batch tile: 3 accumulating MXU pushes + bias + per-half L2 norm."""
    cdt = ws_ref.dtype  # bf16 compute dtype: single MXU pass, f32 accumulate
    acc = jnp.dot(s_ref[...].astype(cdt), ws_ref[...],
                  preferred_element_type=jnp.float32)
    acc = acc + jnp.dot(r_ref[...].astype(cdt), wr_ref[...],
                        preferred_element_type=jnp.float32)
    acc = acc + jnp.dot(p_ref[...].astype(cdt), wp_ref[...],
                        preferred_element_type=jnp.float32)
    proj = acc + b_ref[...]  # [bm, 2*cl]; bias broadcasts over sublanes
    # cols [0:cl) = smiles projection, cols [cl:2*cl) = graph projection

    # Per-half L2 normalization (dim=1) with a lane-index mask — everything
    # stays at the full 2*CL lane width (no sub-128-lane slices, one store).
    lane = jax.lax.broadcasted_iota(jnp.int32, proj.shape, 1)
    in_smiles = lane < cl_dim
    sq = proj * proj
    total = jnp.sum(sq, axis=1, keepdims=True)
    s_ss = jnp.sum(jnp.where(in_smiles, sq, 0.0), axis=1, keepdims=True)
    g_ss = total - s_ss  # saves one XLU reduce + one select
    # rsqrt runs on the EUP (its own VLIW slot); eps keeps padded rows finite.
    inv = jnp.where(in_smiles, jax.lax.rsqrt(s_ss + eps),
                    jax.lax.rsqrt(g_ss + eps))
    o_ref[...] = (proj * inv).astype(o_ref.dtype)


def clme_forward(smiles_feat, react_nodes, prod_nodes, params, *,
                 block_b=1024, compute_dtype=jnp.bfloat16, eps=1e-12):
    """CLME forward: returns (smiles_features, graph_features, logit_scale.exp())."""
    B, s_out = smiles_feat.shape
    _, n_nodes, g_out = react_nodes.shape
    cl = params["gproj_w"].shape[1]
    ng = n_nodes * g_out
    f32 = jnp.float32

    # Activations go straight to the kernel.  The node flatten is a free
    # metadata reshape (row-major contiguous) — no extra HBM pass, and it
    # avoids the badly padded [B, N, G] sublane/lane layout in VMEM.
    # TODO(synk): in a real pipeline the encoders should emit bf16 directly to
    # halve the dominant activation HBM read; here they arrive as-is and the
    # kernel casts in-register.
    react_flat = react_nodes.reshape(B, ng)
    prod_flat = prod_nodes.reshape(B, ng)

    # ---- packed weights (tiny, resident in VMEM across the whole grid).
    # Node-sum pooling folded into the matmul by tiling each gproj half
    # n_nodes times along the contraction axis.  Lanes [0, cl) carry the
    # smiles projection and lanes [cl, 2*cl) the graph projection, so every
    # dot emits the full lane-dense [bm, 2*cl] slab.
    z_s = jnp.zeros((s_out, cl), f32)
    z_g = jnp.zeros((ng, cl), f32)
    ws = jnp.concatenate([params["sproj_w"], z_s], axis=1).astype(compute_dtype)
    wr = jnp.concatenate(
        [z_g, jnp.tile(params["gproj_w"][:g_out, :], (n_nodes, 1))],
        axis=1).astype(compute_dtype)
    wp = jnp.concatenate(
        [z_g, jnp.tile(params["gproj_w"][g_out:, :], (n_nodes, 1))],
        axis=1).astype(compute_dtype)
    bias = jnp.concatenate([params["sproj_b"], params["gproj_b"]],
                           axis=1).astype(f32)  # [1, 2*cl], added post-MXU in f32

    # ---- batch tiling: big sublane(8)-aligned tiles amortize the ~0.35 us
    # per-grid-step cost.  Ragged last tile is handled by Pallas (masked
    # writes), so no jnp.pad copy of the activation slab.
    act_bytes = smiles_feat.dtype.itemsize
    in_row = (s_out + 2 * ng) * act_bytes
    out_row = 2 * cl * 4
    # Double-buffered in+out tiles must stay under v5e's 16 MiB scoped-VMEM
    # default (v6e: 32 MiB, v7x: 32 MiB scoped / 64 MiB physical); raise
    # vmem_limit_bytes if a larger bm is ever wanted.
    vmem_budget = 12 * 1024 * 1024
    max_bm = max(8, (vmem_budget // (2 * (in_row + out_row))) // 8 * 8)
    bm = min(block_b, _round_up(B, 8), max_bm)
    # v7x has 2 TensorCores: make sure the "parallel" batch grid has >= 2 tiles.
    if B > 8 and pl.cdiv(B, bm) < 2:
        bm = _round_up(pl.cdiv(B, 2), 8)
    grid_b = pl.cdiv(B, bm)

    out = pl.pallas_call(
        functools.partial(clme_kernel, cl, eps),
        out_shape=jax.ShapeDtypeStruct((B, 2 * cl), f32),
        grid_spec=pltpu.PrefetchScalarGridSpec(
            num_scalar_prefetch=0,
            grid=(grid_b,),
            in_specs=[
                pl.BlockSpec((bm, s_out), lambda i: (i, 0)),       # smiles tile
                pl.BlockSpec((bm, ng), lambda i: (i, 0)),          # reactant tile
                pl.BlockSpec((bm, ng), lambda i: (i, 0)),          # product tile
                pl.BlockSpec((s_out, 2 * cl), lambda i: (0, 0)),   # resident weights
                pl.BlockSpec((ng, 2 * cl), lambda i: (0, 0)),
                pl.BlockSpec((ng, 2 * cl), lambda i: (0, 0)),
                pl.BlockSpec((1, 2 * cl), lambda i: (0, 0)),       # bias row
            ],
            out_specs=pl.BlockSpec((bm, 2 * cl), lambda i: (i, 0)),
        ),
        compiler_params=pltpu.CompilerParams(
            # batch tiles are independent -> v7x can shard across its 2 TCs.
            dimension_semantics=("parallel",),
        ),
    )(smiles_feat, react_flat, prod_flat, ws, wr, wp, bias)

    smiles_features = out[:, :cl]
    graph_features = out[:, cl:]
    # exp of a single scalar parameter: done in the wrapper, not the kernel.
    logit_scale_exp = jnp.exp(params["logit_scale"])
    return smiles_features, graph_features, logit_scale_exp


def init_params(key, g_output_dim, s_output_dim, cl_hidden_dim):
    k1, k2, k3, k4 = jax.random.split(key, 4)
    # deterministic uniform init mirroring nn.Linear fan-in scaling
    g_in = 2 * g_output_dim
    s_in = s_output_dim
    g_bound = 1.0 / np.sqrt(g_in)
    s_bound = 1.0 / np.sqrt(s_in)
    return {
        "gproj_w": jax.random.uniform(k1, (g_in, cl_hidden_dim),
                                      jnp.float32, -g_bound, g_bound),
        "gproj_b": jax.random.uniform(k2, (1, cl_hidden_dim),
                                      jnp.float32, -g_bound, g_bound),
        "sproj_w": jax.random.uniform(k3, (s_in, cl_hidden_dim),
                                      jnp.float32, -s_bound, s_bound),
        "sproj_b": jax.random.uniform(k4, (1, cl_hidden_dim),
                                      jnp.float32, -s_bound, s_bound),
        "logit_scale": jnp.asarray(np.log(1.0 / 0.07), jnp.float32),
    }


if __name__ == "__main__":
    # small shapes consistent with the module's forward
    B = 8              # batch (number of reactions / SMILES strings)
    N_NODES = 10       # padded nodes per graph
    G_OUT = 16         # g_output_dim (MolEncoder output dim per node)
    S_OUT = 32         # s_output_dim (SMILES_Encoder output dim)
    CL = 64            # cl_hidden_dim  (2*CL = 128 -> lane-dense output slab)

    key = jax.random.PRNGKey(0)
    k_s, k_r, k_p, k_params = jax.random.split(key, 4)

    smiles_feat = jax.random.normal(k_s, (B, S_OUT), jnp.float32)
    react_nodes = jax.random.normal(k_r, (B, N_NODES, G_OUT), jnp.float32)
    prod_nodes = jax.random.normal(k_p, (B, N_NODES, G_OUT), jnp.float32)
    params = init_params(k_params, G_OUT, S_OUT, CL)

    smiles_out, graph_out, logit_scale_exp = clme_forward(
        smiles_feat, react_nodes, prod_nodes, params)
    jax.block_until_ready((smiles_out, graph_out, logit_scale_exp))

    # pure-JAX f32 reference of the CLME-level math.  The kernel contracts in
    # bf16 (single MXU pass, f32 accumulate), so compare at bf16-level
    # tolerance; the L2-normalized outputs are numerically robust to it.
    hi = jax.lax.Precision.HIGHEST
    r_sum = react_nodes.sum(axis=1)
    p_sum = prod_nodes.sum(axis=1)
    gf = jnp.dot(jnp.concatenate([r_sum, p_sum], axis=1), params["gproj_w"],
                 precision=hi) + params["gproj_b"]
    sf = jnp.dot(smiles_feat, params["sproj_w"], precision=hi) + params["sproj_b"]
    gf = gf / jnp.linalg.norm(gf, axis=1, keepdims=True)
    sf = sf / jnp.linalg.norm(sf, axis=1, keepdims=True)

    np.testing.assert_allclose(np.asarray(smiles_out), np.asarray(sf),
                               rtol=2e-2, atol=2e-2)
    np.testing.assert_allclose(np.asarray(graph_out), np.asarray(gf),
                               rtol=2e-2, atol=2e-2)
    np.testing.assert_allclose(float(logit_scale_exp),
                               float(np.exp(np.log(1.0 / 0.07))), rtol=1e-5)
    assert not np.isnan(np.asarray(smiles_out)).any()
    assert not np.isnan(np.asarray(graph_out)).any()

    print("KERNEL_OK")
</pallas_src>

<mosaic_0001>
module attributes {stable_mosaic.version = 11 : i64} {
  func.func @clme_kernel(%arg0: i32, %arg1: memref<8x32xf32, #tpu.memory_space<vmem>>, %arg2: memref<8x160xf32, #tpu.memory_space<vmem>>, %arg3: memref<8x160xf32, #tpu.memory_space<vmem>>, %arg4: memref<32x128xbf16, #tpu.memory_space<vmem>>, %arg5: memref<160x128xbf16, #tpu.memory_space<vmem>>, %arg6: memref<160x128xbf16, #tpu.memory_space<vmem>>, %arg7: memref<1x128xf32, #tpu.memory_space<vmem>>, %arg8: memref<8x128xf32, #tpu.memory_space<vmem>>) attributes {dimension_semantics = [#tpu.dimension_semantics<parallel>], iteration_bounds = array<i64: 1>, scalar_prefetch = 0 : i64, scratch_operands = 0 : i64, tpu.core_type = #tpu.core_type<tc>, window_params = [{transform_indices = @transform_0, window_bounds = array<i64: 8, 32>}, {transform_indices = @transform_1, window_bounds = array<i64: 8, 160>}, {transform_indices = @transform_2, window_bounds = array<i64: 8, 160>}, {pipeline_mode = #tpu.pipeline_mode<synchronous>, transform_indices = @transform_3, window_bounds = array<i64: 32, 128>}, {pipeline_mode = #tpu.pipeline_mode<synchronous>, transform_indices = @transform_4, window_bounds = array<i64: 160, 128>}, {pipeline_mode = #tpu.pipeline_mode<synchronous>, transform_indices = @transform_5, window_bounds = array<i64: 160, 128>}, {pipeline_mode = #tpu.pipeline_mode<synchronous>, transform_indices = @transform_6, window_bounds = array<i64: 1, 128>}, {transform_indices = @transform_7, window_bounds = array<i64: 8, 128>}]} {
    %c0 = arith.constant 0 : index
    %c0_0 = arith.constant 0 : index
    %0 = vector.load %arg1[%c0, %c0_0] : memref<8x32xf32, #tpu.memory_space<vmem>>, vector<8x32xf32>
    %1 = arith.truncf %0 : vector<8x32xf32> to vector<8x32xbf16>
    %c0_1 = arith.constant 0 : index
    %c0_2 = arith.constant 0 : index
    %2 = vector.load %arg4[%c0_1, %c0_2] : memref<32x128xbf16, #tpu.memory_space<vmem>>, vector<32x128xbf16>
    %cst = arith.constant dense<0.000000e+00> : vector<8x128xf32>
    %3 = tpu.matmul %1, %2, %cst {dimension_numbers = #tpu.dot_dimension_numbers<[1], [0], [0], [1], [0, 0, 1, 1], [], []>} : vector<8x32xbf16>, vector<32x128xbf16>, vector<8x128xf32> -> vector<8x128xf32>
    %c0_3 = arith.constant 0 : index
    %c0_4 = arith.constant 0 : index
    %4 = vector.load %arg2[%c0_3, %c0_4] : memref<8x160xf32, #tpu.memory_space<vmem>>, vector<8x160xf32>
    %5 = arith.truncf %4 : vector<8x160xf32> to vector<8x160xbf16>
    %c0_5 = arith.constant 0 : index
    %c0_6 = arith.constant 0 : index
    %6 = vector.load %arg5[%c0_5, %c0_6] : memref<160x128xbf16, #tpu.memory_space<vmem>>, vector<160x128xbf16>
    %cst_7 = arith.constant dense<0.000000e+00> : vector<8x128xf32>
    %7 = tpu.matmul %5, %6, %cst_7 {dimension_numbers = #tpu.dot_dimension_numbers<[1], [0], [0], [1], [0, 0, 1, 1], [], []>} : vector<8x160xbf16>, vector<160x128xbf16>, vector<8x128xf32> -> vector<8x128xf32>
    %8 = arith.addf %3, %7 : vector<8x128xf32>
    %c0_8 = arith.constant 0 : index
    %c0_9 = arith.constant 0 : index
    %9 = vector.load %arg3[%c0_8, %c0_9] : memref<8x160xf32, #tpu.memory_space<vmem>>, vector<8x160xf32>
    %10 = arith.truncf %9 : vector<8x160xf32> to vector<8x160xbf16>
    %c0_10 = arith.constant 0 : index
    %c0_11 = arith.constant 0 : index
    %11 = vector.load %arg6[%c0_10, %c0_11] : memref<160x128xbf16, #tpu.memory_space<vmem>>, vector<160x128xbf16>
    %cst_12 = arith.constant dense<0.000000e+00> : vector<8x128xf32>
    %12 = tpu.matmul %10, %11, %cst_12 {dimension_numbers = #tpu.dot_dimension_numbers<[1], [0], [0], [1], [0, 0, 1, 1], [], []>} : vector<8x160xbf16>, vector<160x128xbf16>, vector<8x128xf32> -> vector<8x128xf32>
    %13 = arith.addf %8, %12 : vector<8x128xf32>
    %c0_13 = arith.constant 0 : index
    %c0_14 = arith.constant 0 : index
    %14 = vector.load %arg7[%c0_13, %c0_14] : memref<1x128xf32, #tpu.memory_space<vmem>>, vector<1x128xf32>
    %15 = vector.broadcast %14 : vector<1x128xf32> to vector<8x128xf32>
    %16 = arith.addf %13, %15 : vector<8x128xf32>
    %17 = tpu.iota {dimensions = array<i32: 1>} : vector<8x128xi32>
    %c64_i32 = arith.constant 64 : i32
    %18 = vector.broadcast %c64_i32 : i32 to vector<8x128xi32>
    %19 = arith.cmpi slt, %17, %18 : vector<8x128xi32>
    %20 = arith.mulf %16, %16 : vector<8x128xf32>
    %cst_15 = arith.constant dense<0.000000e+00> : vector<8xf32>
    %21 = vector.multi_reduction <add>, %20, %cst_15 [1] : vector<8x128xf32> to vector<8xf32>
    %22 = vector.shape_cast %21 : vector<8xf32> to vector<8x1xf32>
    %cst_16 = arith.constant 0.000000e+00 : f32
    %23 = vector.broadcast %cst_16 : f32 to vector<8x128xf32>
    %24 = arith.select %19, %20, %23 : vector<8x128xi1>, vector<8x128xf32>
    %cst_17 = arith.constant dense<0.000000e+00> : vector<8xf32>
    %25 = vector.multi_reduction <add>, %24, %cst_17 [1] : vector<8x128xf32> to vector<8xf32>
    %26 = vector.shape_cast %25 : vector<8xf32> to vector<8x1xf32>
    %27 = arith.subf %22, %26 : vector<8x1xf32>
    %cst_18 = arith.constant 9.99999996E-13 : f32
    %28 = vector.broadcast %cst_18 : f32 to vector<8x1xf32>
    %29 = arith.addf %26, %28 : vector<8x1xf32>
    %30 = math.rsqrt %29 : vector<8x1xf32>
    %cst_19 = arith.constant 9.99999996E-13 : f32
    %31 = vector.broadcast %cst_19 : f32 to vector<8x1xf32>
    %32 = arith.addf %27, %31 : vector<8x1xf32>
    %33 = math.rsqrt %32 : vector<8x1xf32>
    %34 = vector.shape_cast %30 : vector<8x1xf32> to vector<8x1xf32>
    %35 = vector.broadcast %34 : vector<8x1xf32> to vector<8x128xf32>
    %36 = vector.shape_cast %33 : vector<8x1xf32> to vector<8x1xf32>
    %37 = vector.broadcast %36 : vector<8x1xf32> to vector<8x128xf32>
    %38 = arith.select %19, %35, %37 : vector<8x128xi1>, vector<8x128xf32>
    %39 = arith.mulf %16, %38 : vector<8x128xf32>
    %c0_20 = arith.constant 0 : index
    %c0_21 = arith.constant 0 : index
    %40 = vector.load %arg8[%c0_20, %c0_21] : memref<8x128xf32, #tpu.memory_space<vmem>>, vector<8x128xf32>
    tpu.vector_store %arg8[%c0_20, %c0_21], %39 {strides = array<i32>} : memref<8x128xf32, #tpu.memory_space<vmem>>, vector<8x128xf32>,
    return
  }
  func.func @transform_0(%arg0: i32) -> (i32, i32) {
    %c0_i32 = arith.constant 0 : i32
    %c0_i32_0 = arith.constant 0 : i32
    return %arg0, %c0_i32 : i32, i32
  }
  func.func @transform_1(%arg0: i32) -> (i32, i32) {
    %c0_i32 = arith.constant 0 : i32
    %c0_i32_0 = arith.constant 0 : i32
    return %arg0, %c0_i32 : i32, i32
  }
  func.func @transform_2(%arg0: i32) -> (i32, i32) {
    %c0_i32 = arith.constant 0 : i32
    %c0_i32_0 = arith.constant 0 : i32
    return %arg0, %c0_i32 : i32, i32
  }
  func.func @transform_3(%arg0: i32) -> (i32, i32) {
    %c0_i32 = arith.constant 0 : i32
    %c0_i32_0 = arith.constant 0 : i32
    %c0_i32_1 = arith.constant 0 : i32
    return %c0_i32, %c0_i32_0 : i32, i32
  }
  func.func @transform_4(%arg0: i32) -> (i32, i32) {
    %c0_i32 = arith.constant 0 : i32
    %c0_i32_0 = arith.constant 0 : i32
    %c0_i32_1 = arith.constant 0 : i32
    return %c0_i32, %c0_i32_0 : i32, i32
  }
  func.func @transform_5(%arg0: i32) -> (i32, i32) {
    %c0_i32 = arith.constant 0 : i32
    %c0_i32_0 = arith.constant 0 : i32
    %c0_i32_1 = arith.constant 0 : i32
    return %c0_i32, %c0_i32_0 : i32, i32
  }
  func.func @transform_6(%arg0: i32) -> (i32, i32) {
    %c0_i32 = arith.constant 0 : i32
    %c0_i32_0 = arith.constant 0 : i32
    %c0_i32_1 = arith.constant 0 : i32
    return %c0_i32, %c0_i32_0 : i32, i32
  }
  func.func @transform_7(%arg0: i32) -> (i32, i32) {
    %c0_i32 = arith.constant 0 : i32
    %c0_i32_0 = arith.constant 0 : i32
    return %arg0, %c0_i32 : i32, i32
  }
}

</mosaic_0001>

<bundles_post_ra>
// kernel: tpu_custom_call.1
= control target key start
LH: loop header
LB: loop body
LE: loop exit
PB: predicated region body
PF: predicated region fallthrough
CT: control target
= control target key end

     0   :  { %12 = vsyncpa [#allocation3], 0  ;;  %s797_s0 = inlined_call_operand.hbm [shape: f32[8,32], index: 0, kind: input, shape index: {}]   ;;  %s798_s1 = inlined_call_operand.hbm [shape: f32[8,160], index: 1, kind: input, shape index: {}]   ;;  %s799_s2 = inlined_call_operand.hbm [shape: f32[8,160], index: 2, kind: input, shape index: {}]   ;;  %s800_s3 = inlined_call_operand.hbm [shape: bf16[32,128], index: 3, kind: input, shape index: {}]   ;;  %s801_s4 = inlined_call_operand.hbm [shape: bf16[160,128], index: 4, kind: input, shape index: {}]   ;;  %s802_s5 = inlined_call_operand.hbm [shape: bf16[160,128], index: 5, kind: input, shape index: {}]   ;;  %s803_s6 = inlined_call_operand.vmem [shape: f32[1,128], index: 6, kind: input, shape index: {}]   ;;  %s804_s7 = inlined_call_operand.hbm [shape: f32[8,128], index: 7, kind: output, shape index: {}]  }
   0x1   :  { %13 = vsyncpa [#allocation6], 0 }
   0x2   :  { %14 = vsyncpa [#allocation9], 0 }
   0x3   :  { %15 = vsyncpa [#allocation12], 0 }
   0x4   :  { %16 = vsyncpa [#allocation4], 0  ;;  %s689_s24 = smov [#allocation5]   ;;  %s690_s26 = smov [#allocation8]  }
   0x5   :  { %s33_s25 = sshll.u32 %s689_s24, 4  ;;  %s52_s27 = sshll.u32 %s690_s26, 4  ;;  %s34_s25 = int_to_ptr.vmem [resolvable:$true] %s33_s25  ;;  %s53_s27 = int_to_ptr.vmem [resolvable:$true] %s52_s27 }
   0x6   :  { %s547_s28 = scalar_lea.vmem %s34_s25, 256  ;;  %p552_p1 = scmp.lt.s32.totalorder %s34_s25, %s34_s25 }
   0x7   :  { %p548_p0 = scmp.ne.s32.totalorder %s34_s25, %s547_s28  ;;  %p553_p2 = scmp.lt.s32.totalorder %s547_s28, %s547_s28 }
   0x9   :  { %p554_p3 = por %p553_p2, %p552_p1 }
   0xb   :  { %p555_p4 = pnand %p554_p3, %p548_p0 }
   0xd   :  { %558 = shalt.err (!%p555_p4)
}
   0xe   :  { %36 = dma.hbm_to_vmem [thread:$0]  %s798_s1, 256, %s34_s25, [#allocation6]  }
   0xf   :  { %s567_s8 = scalar_lea.vmem %s53_s27, 256  ;;  %p572_p6 = scmp.lt.s32.totalorder %s53_s27, %s53_s27 }
  0x10   :  { %p568_p5 = scmp.ne.s32.totalorder %s53_s27, %s567_s8  ;;  %p573_p7 = scmp.lt.s32.totalorder %s567_s8, %s567_s8 }
  0x12   :  { %p574_p8 = por %p573_p7, %p572_p6 }
  0x14   :  { %p575_p9 = pnand %p574_p8, %p568_p5 }
  0x16   :  { %578 = shalt.err (!%p575_p9)
}
  0x17   :  { %s691_s9 = smov 64   ;;  %s692_s10 = smov 4  }
  0x18   :  { %58 = dma.hbm_to_vmem [thread:$0]  %s800_s3, 256, %s53_s27, [#allocation9], %s691_s9, %s691_s9, %s692_s10  }
  0x19   :  { %s693_s13 = smov [#allocation2]   ;;  %s694_s15 = smov [#allocation7]  }
  0x1a   :  { %s23_s14 = sshll.u32 %s693_s13, 4  ;;  %s43_s1 = sshll.u32 %s694_s15, 4  ;;  %s24_s14 = int_to_ptr.vmem [resolvable:$true] %s23_s14  ;;  %s44_s1 = int_to_ptr.vmem [resolvable:$true] %s43_s1 }
  0x1b   :  { %s587_s16 = scalar_lea.vmem %s24_s14, 128  ;;  %p592_p11 = scmp.lt.s32.totalorder %s24_s14, %s24_s14 }
  0x1c   :  { %p588_p10 = scmp.ne.s32.totalorder %s24_s14, %s587_s16  ;;  %p593_p12 = scmp.lt.s32.totalorder %s587_s16, %s587_s16 }
  0x1e   :  { %p594_p13 = por %p593_p12, %p592_p11 }
  0x20   :  { %p595_p0 = pnand %p594_p13, %p588_p10 }
  0x22   :  { %598 = shalt.err (!%p595_p0)
}
  0x23   :  { %26 = dma.hbm_to_vmem [thread:$0]  %s797_s0, 128, %s24_s14, [#allocation3]  }
  0x24   :  { %s607_s19 = scalar_lea.vmem %s44_s1, 256  ;;  %p612_p2 = scmp.lt.s32.totalorder %s44_s1, %s44_s1 }
  0x25   :  { %p608_p1 = scmp.ne.s32.totalorder %s44_s1, %s607_s19  ;;  %p613_p3 = scmp.lt.s32.totalorder %s607_s19, %s607_s19 }
  0x27   :  { %p614_p4 = por %p613_p3, %p612_p2 }
  0x29   :  { %p615_p5 = pnand %p614_p4, %p608_p1 }
  0x2b   :  { %618 = shalt.err (!%p615_p5)
}
  0x2c   :  { %46 = dma.hbm_to_vmem [thread:$0]  %s799_s2, 256, %s44_s1, [#allocation6]  }
  0x2d   :  { %s695_s21 = smov [#allocation10]   ;;  %s696_s23 = smov [#allocation11]  }
  0x2e   :  { %s64_s22 = sshll.u32 %s695_s21, 4  ;;  %s76_s24 = sshll.u32 %s696_s23, 4  ;;  %s65_s22 = int_to_ptr.vmem [resolvable:$true] %s64_s22  ;;  %s77_s24 = int_to_ptr.vmem [resolvable:$true] %s76_s24 }
  0x2f   :  { %s627_s25 = scalar_lea.vmem %s65_s22, 1280  ;;  %p632_p7 = scmp.lt.s32.totalorder %s65_s22, %s65_s22 }
  0x30   :  { %p628_p6 = scmp.ne.s32.totalorder %s65_s22, %s627_s25  ;;  %p633_p8 = scmp.lt.s32.totalorder %s627_s25, %s627_s25 }
  0x32   :  { %p634_p9 = por %p633_p8, %p632_p7 }
  0x34   :  { %p635_p10 = pnand %p634_p9, %p628_p6 }
  0x36   :  { %638 = shalt.err (!%p635_p10)
}
  0x37   :  { %70 = dma.hbm_to_vmem [thread:$0]  %s801_s4, 1280, %s65_s22, [#allocation9], %s691_s9, %s691_s9, %s692_s10  }
  0x38   :  { %s647_s2 = scalar_lea.vmem %s77_s24, 1280  ;;  %p652_p12 = scmp.lt.s32.totalorder %s77_s24, %s77_s24 }
  0x39   :  { %p648_p11 = scmp.ne.s32.totalorder %s77_s24, %s647_s2  ;;  %p653_p13 = scmp.lt.s32.totalorder %s647_s2, %s647_s2 }
  0x3b   :  { %p654_p0 = por %p653_p13, %p652_p12 }
  0x3d   :  { %p655_p1 = pnand %p654_p0, %p648_p11 }
  0x3f   :  { %658 = shalt.err (!%p655_p1)
}
  0x40   :  { %82 = dma.hbm_to_vmem [thread:$0]  %s802_s5, 1280, %s77_s24, [#allocation12], %s691_s9, %s691_s9, %s692_s10  }
  0x41   :  { %679 = dma.done.wait [#allocation3], 128  }
  0x42   :  { %680 = vsyncadd [#allocation3], 4294967168 }
  0x43   :  { %681 = dma.done.wait [#allocation6], 512  }
  0x44   :  { %682 = vsyncadd [#allocation6], 4294966784 }
  0x45   :  { %683 = dma.done.wait [#allocation9], 1536  }
  0x46   :  { %684 = vsyncadd [#allocation9], 4294965760 }
  0x47   :  { %685 = dma.done.wait [#allocation12], 1280  }
  0x48   :  { %686 = vsyncadd [#allocation12], 4294966016  ;;  %v697_v0 = vmov 0   ;;  %v698_v1 = vmov 0.0   ;;  %vm699_vm0 = vmmov 0   ;;  %v513_v2 = vld [vmem:[#allocation10 + $0x38] sm:$0xff]   ;;  %v429_v43 = vlaneseq }
  0x49   :  { %198 = vmatprep.subr.bf16.mxu0 %v697_v0  ;;  %493 = vmatprep.subr.bf16.mxu1 %v698_v1  ;;  %v514_v3 = vld [vmem:[#allocation8 + $0x8] sm:$0xff]   ;;  %v515_v4 = vld [vmem:[#allocation10 + $0x30] sm:$0xff]   ;;  %v104_v6 = vld [vmem:[#allocation2] sm:$0xff]  ;;  %vm194_vm1 = vcmask 261120  }
  0x4a   :  { %497 = vmatprep.mubr.msk.bf16.mxu1 %vm699_vm0, %v698_v1  ;;  %199 = vmatpush1.bf16.msra.mxu0 %v513_v2  ;;  %v516_v5 = vld [vmem:[#allocation8] sm:$0xff]   ;;  %v105_v7 = vpack.c.bf16 %v104_v6, %v104_v6  ;;  %v517_v8 = vld [vmem:[#allocation10 + $0x28] sm:$0xff]   ;;  %v519_v10 = vld [vmem:[#allocation10 + $0x20] sm:$0xff]   ;;  %v430_v49 = vand.u32 127, %v429_v43 }
  0x4b   :  { %494 = vmatpush3.bf16.msra.mxu1 %v514_v3  ;;  %200 = vmatprep.subr.bf16.mxu0 %v697_v0  ;;  %v518_v9 = vld [vmem:[#allocation11 + $0x38] sm:$0xff]   ;;  %v520_v11 = vld [vmem:[#allocation11 + $0x30] sm:$0xff]   ;;  %v521_v12 = vld [vmem:[#allocation10 + $0x18] sm:$0xff]  }
  0x4c   :  { %495 = vmatprep.subr.bf16.mxu1 %v698_v1  ;;  %v522_v13 = vld [vmem:[#allocation11 + $0x28] sm:$0xff]   ;;  %v523_v14 = vld [vmem:[#allocation10 + $0x10] sm:$0xff]   ;;  %v525_v18 = vld [vmem:[#allocation10 + $0x8] sm:$0xff]   ;;  %vm431_vm2 = vcmp.lt.s32.totalorder %v430_v49, 64 }
  0x4d   :  { %v524_v15 = vld [vmem:[#allocation11 + $0x20] sm:$0xff]   ;;  %v111_v16 = vld [vmem:[#allocation5 + $0x8] sm:$0xff]  ;;  %v526_v19 = vld [vmem:[#allocation11 + $0x18] sm:$0xff]  }
  0x4e   :  { %201 = vmatpush1.bf16.msra.mxu0 %v515_v4  ;;  %v113_v17 = vpack.c.bf16 %v111_v16, %v111_v16  ;;  %v294_v20 = vld [vmem:[#allocation7 + $0x8] sm:$0xff]  ;;  %v527_v22 = vld [vmem:[#allocation10] sm:$0xff]   ;;  %v530_v25 = vld [vmem:[#allocation11 + $0x8] sm:$0xff]  }
  0x4f   :  { %496 = vmatpush3.bf16.msra.mxu1 %v516_v5  ;;  %202 = vmatprep.subr.bf16.mxu0 %v697_v0  ;;  %v296_v21 = vpack.c.bf16 %v294_v20, %v294_v20  ;;  %v528_v23 = vld [vmem:[#allocation11 + $0x10] sm:$0xff]   ;;  %v529_v24 = vld [vmem:[#allocation10 + $0x48] sm:$0xff]   ;;  %v110_v27 = vld [vmem:[#allocation5] sm:$0xff] }
  0x50   :  { %380 = vmatprep.subr.bf16.mxu1 %v697_v0  ;;  %474 = vmatprep.mubr.msk.bf16.mxu0 %vm194_vm1, %v113_v17  ;;  %v531_v26 = vld [vmem:[#allocation10 + $0x40] sm:$0xff]   ;;  %v532_v28 = vld [vmem:[#allocation11] sm:$0xff]   ;;  %v112_v29 = vpack.c.bf16 %v110_v27, %v110_v27  ;;  %v533_v30 = vld [vmem:[#allocation11 + $0x48] sm:$0xff]  }
  0x51   :  { %v534_v31 = vld [vmem:[#allocation11 + $0x40] sm:$0xff]   ;;  %v293_v32 = vld [vmem:[#allocation7] sm:$0xff]  ;;  %v489_v45 = vld [vmem:[%s803_s6] ss:$0 sm:$0xff]  ;;  %s700_s6 = smov [#allocation13]  }
  0x52   :  { %498 = vmatmul.mubr.msk.bf16.vlgmr.msra.gmra.mxu1 %vm194_vm1, %v105_v7  ;;  %203 = vmatpush1.bf16.msra.mxu0 %v517_v8  ;;  %v295_v33 = vpack.c.bf16 %v293_v32, %v293_v32  ;;  %s452_s29 = sshll.u32 %s700_s6, 4  ;;  %s453_s29 = int_to_ptr.vmem [resolvable:$true] %s452_s29 }
  0x53   :  { %381 = vmatpush1.bf16.msra.mxu1 %v518_v9  ;;  %204 = vmatprep.subr.bf16.mxu0 %v697_v0  ;;  %s659_s30 = scalar_lea.vmem %s453_s29, 128  ;;  %p664_p3 = scmp.lt.s32.totalorder %s453_s29, %s453_s29 }
  0x54   :  { %382 = vmatprep.subr.bf16.mxu1 %v697_v0  ;;  %488 = vmatprep.mubr.msk.bf16.mxu1 %vm194_vm1, %v296_v21  ;;  %p660_p2 = scmp.ne.s32.totalorder %s453_s29, %s659_s30  ;;  %p665_p4 = scmp.lt.s32.totalorder %s659_s30, %s659_s30 }
  0x56   :  { %205 = vmatpush1.bf16.msra.mxu0 %v519_v10  ;;  %p666_p5 = por %p665_p4, %p664_p3 }
  0x57   :  { %383 = vmatpush1.bf16.msra.mxu1 %v520_v11  ;;  %206 = vmatprep.subr.bf16.mxu0 %v697_v0 }
  0x58   :  { %384 = vmatprep.subr.bf16.mxu1 %v697_v0  ;;  %p667_p6 = pnand %p666_p5, %p660_p2 }
  0x5a   :  { %207 = vmatpush1.bf16.msra.mxu0 %v521_v12 }
  0x5b   :  { %385 = vmatpush1.bf16.msra.mxu1 %v522_v13  ;;  %208 = vmatprep.subr.bf16.mxu0 %v697_v0 }
  0x5c   :  { %386 = vmatprep.subr.bf16.mxu1 %v697_v0 }
  0x5e   :  { %209 = vmatpush1.bf16.msra.mxu0 %v523_v14 }
  0x5f   :  { %387 = vmatpush1.bf16.msra.mxu1 %v524_v15  ;;  %210 = vmatprep.subr.bf16.mxu0 %v697_v0 }
  0x60   :  { %388 = vmatprep.subr.bf16.mxu1 %v697_v0 }
  0x62   :  { %211 = vmatpush1.bf16.msra.mxu0 %v525_v18 }
  0x63   :  { %389 = vmatpush1.bf16.msra.mxu1 %v526_v19  ;;  %212 = vmatprep.subr.bf16.mxu0 %v697_v0 }
  0x64   :  { %390 = vmatprep.subr.bf16.mxu1 %v697_v0 }
  0x66   :  { %213 = vmatpush1.bf16.msra.mxu0 %v527_v22 }
  0x67   :  { %391 = vmatpush1.bf16.msra.mxu1 %v528_v23  ;;  %226 = vmatprep.subr.bf16.mxu0 %v697_v0 }
  0x68   :  { %392 = vmatprep.subr.bf16.mxu1 %v697_v0 }
  0x6a   :  { %227 = vmatpush2.bf16.msra.mxu0 %v529_v24 }
  0x6b   :  { %393 = vmatpush1.bf16.msra.mxu1 %v530_v25  ;;  %228 = vmatprep.subr.bf16.mxu0 %v697_v0 }
  0x6c   :  { %394 = vmatprep.subr.bf16.mxu1 %v697_v0 }
  0x6e   :  { %229 = vmatpush2.bf16.msra.mxu0 %v531_v26 }
  0x6f   :  { %395 = vmatpush1.bf16.msra.mxu1 %v532_v28 }
  0x70   :  { %408 = vmatprep.subr.bf16.mxu1 %v697_v0 }
  0x71   :  { %231 = vmatmul.mubr.bf16.vlgmr.msra.gmra.mxu0 %v112_v29 }
  0x73   :  { %409 = vmatpush2.bf16.msra.mxu1 %v533_v30 }
  0x74   :  { %410 = vmatprep.subr.bf16.mxu1 %v697_v0 }
  0x77   :  { %411 = vmatpush2.bf16.msra.mxu1 %v534_v31 }
  0x7a   :  { %413 = vmatmul.mubr.bf16.vlgmr.msra.gmra.mxu1 %v295_v33 }
 0x112   :  { %v287_v34 = vpop.f32.mrf.mxu1 }
 0x114   :  { %v499_v35 = vpop.f32.mrf.mxu1 }
 0x116   :  { %v290_v36 = vpop.f32.mrf.mxu1 }
 0x118   :  { %v500_v37 = vpop.f32.mrf.mxu1 }
 0x131   :  { %v232_v38 = vpop.f32.mrf.mxu0 }
 0x132   :  { %v288_v42 = vadd.f32 %v287_v34, %v232_v38 }
 0x133   :  { %v234_v39 = vpop.f32.mrf.mxu0 }
 0x135   :  { %v235_v40 = vpop.f32.mrf.mxu0 }
 0x137   :  { %v236_v41 = vpop.f32.mrf.mxu0 }
 0x13a   :  { %v414_v44 = vpop.f32.mrf.mxu1 }
 0x13b   :  { %v420_v46 = vadd.f32 %v414_v44, %v288_v42 }
 0x13c   :  { %v416_v47 = vpop.f32.mrf.mxu1 }
 0x13d   :  { %v428_v48 = vadd.f32 %v489_v45, %v420_v46 }
 0x13e   :  { %v417_v50 = vpop.f32.mrf.mxu1 }
 0x13f   :  { %v432_v51 = vmul.f32 %v428_v48, %v428_v48 }
 0x140   :  { %v418_v52 = vpop.f32.mrf.mxu1 }
 0x141   :  { %433 = vadd.xlane.f32.xlu0 %v432_v51  ;;  %v435_v53 = vsel %vm431_vm2, %v432_v51, 0.0 }
 0x145   :  { %436 = vadd.xlane.f32.xlu0 %v435_v53 }
 0x1ca   :  { %v434_v54 = vpop.xlane.xlu0 %433 }
 0x1ce   :  { %v437_v55 = vpop.xlane.xlu0 %436 }
 0x1cf   :  { %v438_v56 = vsub.f32 %v434_v54, %v437_v55  ;;  %v439_v57 = vadd.f32 1e-12, %v437_v55 }
 0x1d1   :  { %v441_v58 = vadd.f32 1e-12, %v438_v56  ;;  %535 = vrsqrt.f32 %v439_v57 }
 0x1d3   :  { %537 = vrsqrt.f32 %v441_v58 }
 0x1de   :  { %v536_v59 = vpop.eup %535 }
 0x1e0   :  { %v538_v60 = vpop.eup %537 }
 0x1e1   :  { %v443_v61 = vsel %vm431_vm2, %v536_v59, %v538_v60 }
 0x1e2   :  { %v444_v62 = vmul.f32 %v443_v61, %v428_v48 }
 0x1e4   :  { %445 = vst [vmem:[#allocation13] sm:$0xff] %v444_v62 }
 0x1e5   :  { %670 = shalt.err (!%p667_p6)
}
 0x1e6   :  { %455 = dma.vmem_to_hbm [thread:$0]  %s453_s29, 128, %s804_s7, [#allocation4]  }
 0x1e7   :  { %687 = dma.done.wait [#allocation4], 128  }
 0x1e8   :  { %688 = vsyncadd [#allocation4], 4294967168 }
 0x1e9   :  { %459 = vsyncpa [#allocation3], 1 }
 0x1ea   :  { %460 = vsyncpa [#allocation6], 1 }
 0x1eb   :  { %461 = vsyncpa [#allocation9], 1 }
 0x1ec   :  { %462 = vsyncpa [#allocation12], 1 }
 0x1ed   :  { %463 = vsyncpa [#allocation4], 1 }

</bundles_post_ra>
